<compile_context>
chip_gen: v6e
topology: v6e:2x2x1
jax: 0.10.0
libtpu: 0.0.40
codegen_flags: <defaults>
</compile_context>

<pallas_src>
import jax
import jax.numpy as jnp
import numpy as np
from jax.experimental import pallas as pl
from jax.experimental.pallas import tpu as pltpu

NUM_CLASSES = 4
GAMMA = 2.0           # FocalLoss default (gamma == 2 -> implemented as a square)
JACCARD_ALPHA = 0.9
JACCARD_EPS = 1e-5

MAX_TILE = 32768      # pixels per grid step (multiple of 128)
FOLD_WIDTH = 512      # lanes kept live in the VMEM accumulators


def _round_up(x, m):
    return ((x + m - 1) // m) * m


def _pick_tiling(hw, max_tile=MAX_TILE):
    """Return (tile, hw_pad): tile is a multiple of 128 that divides hw_pad >= hw."""
    hw128 = _round_up(hw, 128)
    cap = min(max_tile, hw128)
    cap -= cap % 128
    tile = cap
    while hw128 % tile != 0:
        tile -= 128
    if tile >= min(cap, 4096):
        return tile, hw128
    # Awkward factorization (e.g. 128 * large prime): pad up to a big tile instead of
    # collapsing to tiny 128-pixel steps.
    return cap, _round_up(hw, cap)


def _pick_fold_width(tile):
    for fw in (FOLD_WIDTH, 256, 128):
        if tile % fw == 0:
            return fw
    return tile


def _make_seg_kernel(C, tile, fold_w, blocks_per_chunk, hw_valid, needs_mask):
    n_fold = tile // fold_w

    def fold(term):
        # Register-level fold of (rows, tile) -> (rows, fold_w); static lane-aligned slices,
        # so only a narrow accumulator load/store hits VMEM per grid step.
        acc = term[:, 0:fold_w]
        for i in range(1, n_fold):
            acc = acc + term[:, i * fold_w:(i + 1) * fold_w]
        return acc

    def kernel(logits_ref, target_ref,
               inter_out, psum_out, tsum_out, focal_out,
               inter_acc, psum_acc, tsum_acc, focal_acc):
        p = pl.program_id(2)

        @pl.when(p == 0)
        def _init():
            inter_acc[...] = jnp.zeros_like(inter_acc)
            psum_acc[...] = jnp.zeros_like(psum_acc)
            tsum_acc[...] = jnp.zeros_like(tsum_acc)
            focal_acc[...] = jnp.zeros_like(focal_acc)

        x = logits_ref[...].astype(jnp.float32)            # (C, T) logits
        t = target_ref[...].astype(jnp.int32)              # (1, T) labels in [0, C]

        # softmax over the channel (sublane) axis
        m = jnp.max(x, axis=0, keepdims=True)              # (1, T)  XLU
        e = jnp.exp(x - m)                                 # (C, T)  EUP
        s = jnp.sum(e, axis=0, keepdims=True)              # (1, T)  XLU
        inv_s = pl.reciprocal(s)                           # exact; approx is marginal vs 1e-4 check
        pred = e * inv_s                                   # (C, T)

        # one_hot(target, C+1).permute(0,3,1,2)[:, 1:]  ==  (target - 1 == cls)
        cls = jax.lax.broadcasted_iota(jnp.int32, (C, 1), 0)   # grid-invariant, 1 lane wide
        onehot = ((t - 1) == cls).astype(jnp.float32)      # (C, T)

        pt_terms = pred * onehot                           # (C, T), reused for inter and p_t

        # Per-pixel focal term on (1, T); gamma == 2 -> square; label 0 contributes nothing.
        p_t = jnp.sum(pt_terms, axis=0, keepdims=True)     # (1, T)  XLU sublane reduce
        x_t = jnp.sum(x * onehot, axis=0, keepdims=True)   # (1, T)  XLU sublane reduce
        valid = (t >= 1).astype(jnp.float32)               # (1, T)
        one_minus = 1.0 - p_t
        neg_logp_t = jnp.log(s) + (m - x_t)                # -log_softmax at the target class
        focal_pix = (valid * neg_logp_t) * (one_minus * one_minus)

        if needs_mask:
            # Only psum is contaminated by pad pixels (pad label 0 zeroes everything else).
            base = (pl.program_id(1) * blocks_per_chunk + p) * tile
            col = jax.lax.broadcasted_iota(jnp.int32, (1, tile), 1)
            inb = ((base + col) < hw_valid).astype(jnp.float32)
            psum_term = pred * inb
        else:
            psum_term = pred

        # Lane-parallel partial sums, folded in registers into narrow accumulators.
        inter_acc[...] += fold(pt_terms)
        psum_acc[...] += fold(psum_term)
        tsum_acc[...] += fold(onehot)
        focal_acc[...] += fold(focal_pix)

        @pl.when(p == pl.num_programs(2) - 1)
        def _finalize():
            def reduce_bcast(acc_ref, rows):
                # single cross-lane reduce per (image, chunk); broadcast keeps the store lane-dense
                return jnp.broadcast_to(
                    jnp.sum(acc_ref[...], axis=1, keepdims=True), (rows, 128))

            inter_out[...] = reduce_bcast(inter_acc, C)
            psum_out[...] = reduce_bcast(psum_acc, C)
            tsum_out[...] = reduce_bcast(tsum_acc, C)
            focal_out[...] = reduce_bcast(focal_acc, 1)

    return kernel


def semantic_segmentation_loss(pred_logits, target, *, num_classes=NUM_CLASSES,
                               jaccard_alpha=JACCARD_ALPHA, eps=JACCARD_EPS,
                               max_tile=MAX_TILE):
    """pred_logits: (N, C, H, W) float (NCHW, as in PyTorch);
       target:      (N, H, W)    int labels in [0, num_classes]."""
    N, C, H, W = pred_logits.shape
    assert C == num_classes
    HW = H * W

    tile, hw_pad = _pick_tiling(HW, max_tile)
    fold_w = _pick_fold_width(tile)
    n_blocks = hw_pad // tile
    S = 2 if (n_blocks % 2 == 0 and n_blocks >= 2) else 1   # pixel super-chunks (v7x 2-TC)
    P = n_blocks // S
    needs_mask = hw_pad != HW

    # Free reshapes -- no HBM transpose pass.
    logits_r = pred_logits.reshape(N, C, HW)
    # TODO(synk): storing the target as int8 upstream would cut its HBM traffic 4x (v5e win).
    target_r = target.astype(jnp.int32).reshape(N, 1, HW)
    if needs_mask:
        padn = hw_pad - HW
        logits_r = jnp.pad(logits_r, ((0, 0), (0, 0), (0, padn)))
        target_r = jnp.pad(target_r, ((0, 0), (0, 0), (0, padn)))   # pad label 0 (ignored)

    kernel = _make_seg_kernel(C, tile, fold_w, P, HW, needs_mask)

    part_cls = jax.ShapeDtypeStruct((N, S, C, 128), jnp.float32)
    part_pix = jax.ShapeDtypeStruct((N, S, 1, 128), jnp.float32)

    cls_out_spec = pl.BlockSpec(
        (pl.Squeezed(), pl.Squeezed(), C, 128), lambda n, s, p: (n, s, 0, 0))
    pix_out_spec = pl.BlockSpec(
        (pl.Squeezed(), pl.Squeezed(), 1, 128), lambda n, s, p: (n, s, 0, 0))

    inter, psum, tsum, focal = pl.pallas_call(
        kernel,
        out_shape=(part_cls, part_cls, part_cls, part_pix),
        grid_spec=pltpu.PrefetchScalarGridSpec(
            num_scalar_prefetch=0,
            grid=(N, S, P),
            in_specs=[
                pl.BlockSpec((pl.Squeezed(), C, tile),
                             lambda n, s, p: (n, 0, s * P + p)),
                pl.BlockSpec((pl.Squeezed(), 1, tile),
                             lambda n, s, p: (n, 0, s * P + p)),
            ],
            out_specs=(cls_out_spec, cls_out_spec, cls_out_spec, pix_out_spec),
            scratch_shapes=[pltpu.VMEM((C, fold_w), jnp.float32),
                            pltpu.VMEM((C, fold_w), jnp.float32),
                            pltpu.VMEM((C, fold_w), jnp.float32),
                            pltpu.VMEM((1, fold_w), jnp.float32)],
        ),
        compiler_params=pltpu.CompilerParams(
            dimension_semantics=("parallel", "parallel", "arbitrary")),
    )(logits_r, target_r)

    # Tiny final combine in plain JAX (the Jaccard sums must be combined over the whole batch
    # before the log anyway; keeping it here leaves both grid axes megacore-parallel).
    inter_c = inter[:, :, :, 0].sum(axis=(0, 1))     # (C,)
    psum_c = psum[:, :, :, 0].sum(axis=(0, 1))       # (C,)
    tsum_c = tsum[:, :, :, 0].sum(axis=(0, 1))       # (C,)
    focal_sum = focal[:, :, 0, 0].sum()              # scalar

    union = psum_c + tsum_c - inter_c + eps
    iou = inter_c / union + eps
    jac = -jnp.sum(jnp.log(iou)) / num_classes
    focal_loss = focal_sum / (H * W)
    return jaccard_alpha * jac + focal_loss


def reference_loss(pred_logits, target, *, num_classes=NUM_CLASSES,
                   jaccard_alpha=JACCARD_ALPHA, gamma=GAMMA, eps=JACCARD_EPS):
    """Pure-JAX port of the PyTorch module, for verification."""
    x = pred_logits.astype(jnp.float32)
    N, C, H, W = x.shape
    pred = jax.nn.softmax(x, axis=1)
    logp = jax.nn.log_softmax(x, axis=1)
    onehot = jax.nn.one_hot(target, num_classes + 1)          # (N, H, W, C+1)
    onehot = jnp.transpose(onehot, (0, 3, 1, 2))[:, 1:]        # (N, C, H, W)
    focal = jnp.sum(((1.0 - pred) ** gamma) * (-onehot * logp)) / (H * W)

    jac = 0.0
    for cls in range(num_classes):
        tmask = (target - 1 == cls).astype(jnp.float32)
        p = pred[:, cls]
        inter = jnp.sum(p * tmask)
        iou = inter / (jnp.sum(p) + jnp.sum(tmask) - inter + eps) + eps
        jac = jac - jnp.log(iou)
    jac = jac / num_classes
    return jaccard_alpha * jac + focal


def _check(pred_logits, target, **kwargs):
    loss = semantic_segmentation_loss(pred_logits, target, **kwargs)
    loss = jax.block_until_ready(loss)
    ref = reference_loss(pred_logits, target)
    np.testing.assert_allclose(np.asarray(loss), np.asarray(ref), rtol=1e-4, atol=1e-5)


if __name__ == "__main__":
    key = jax.random.PRNGKey(0)
    k1, k2, k3, k4, k5, k6 = jax.random.split(key, 6)

    # Main case: N=2, C=4, 16x16 (single-tile path).
    pred_logits = jax.random.normal(k1, (2, NUM_CLASSES, 16, 16), dtype=jnp.float32)
    target = jax.random.randint(k2, (2, 16, 16), 0, NUM_CLASSES + 1, dtype=jnp.int32)
    _check(pred_logits, target)

    # Multi-chunk / multi-step paths (small forced tiles): exercises the S super-chunk axis,
    # accumulation across the arbitrary axis, and the register fold.
    pl32 = jax.random.normal(k3, (2, NUM_CLASSES, 32, 32), dtype=jnp.float32)
    tg32 = jax.random.randint(k4, (2, 32, 32), 0, NUM_CLASSES + 1, dtype=jnp.int32)
    _check(pl32, tg32, max_tile=256)     # n_blocks=4 -> S=2, P=2
    _check(pl32, tg32, max_tile=1024)    # tile=1024 -> fold_w=512, n_fold=2

    # Non-128-divisible spatial size: exercises padding + in-kernel psum mask.
    pl10 = jax.random.normal(k5, (1, NUM_CLASSES, 10, 10), dtype=jnp.float32)
    tg10 = jax.random.randint(k6, (1, 10, 10), 0, NUM_CLASSES + 1, dtype=jnp.int32)
    _check(pl10, tg10)

    print("KERNEL_OK")
</pallas_src>

<mosaic_0001>
module attributes {stable_mosaic.version = 11 : i64} {
  func.func @kernel(%arg0: i32, %arg1: i32, %arg2: i32, %arg3: memref<1x4x256xf32, #tpu.memory_space<vmem>>, %arg4: memref<1x1x256xi32, #tpu.memory_space<vmem>>, %arg5: memref<1x1x4x128xf32, #tpu.memory_space<vmem>>, %arg6: memref<1x1x4x128xf32, #tpu.memory_space<vmem>>, %arg7: memref<1x1x4x128xf32, #tpu.memory_space<vmem>>, %arg8: memref<1x1x1x128xf32, #tpu.memory_space<vmem>>, %arg9: memref<4x256xf32, #tpu.memory_space<vmem>>, %arg10: memref<4x256xf32, #tpu.memory_space<vmem>>, %arg11: memref<4x256xf32, #tpu.memory_space<vmem>>, %arg12: memref<1x256xf32, #tpu.memory_space<vmem>>) attributes {dimension_semantics = [#tpu.dimension_semantics<parallel>, #tpu.dimension_semantics<parallel>, #tpu.dimension_semantics<arbitrary>], iteration_bounds = array<i64: 2, 1, 1>, scalar_prefetch = 0 : i64, scratch_operands = 4 : i64, tpu.core_type = #tpu.core_type<tc>, window_params = [{transform_indices = @transform_0, window_bounds = array<i64: 1, 4, 256>}, {transform_indices = @transform_1, window_bounds = array<i64: 1, 1, 256>}, {transform_indices = @transform_2, window_bounds = array<i64: 1, 1, 4, 128>}, {transform_indices = @transform_3, window_bounds = array<i64: 1, 1, 4, 128>}, {transform_indices = @transform_4, window_bounds = array<i64: 1, 1, 4, 128>}, {transform_indices = @transform_5, window_bounds = array<i64: 1, 1, 1, 128>}]} {
    %c0_i32 = arith.constant 0 : i32
    %0 = arith.cmpi eq, %arg2, %c0_i32 : i32
    %1 = arith.extui %0 : i1 to i32
    %c0_i32_0 = arith.constant 0 : i32
    %2 = arith.cmpi ne, %1, %c0_i32_0 : i32
    scf.if %2 {
      %cst_29 = arith.constant 0.000000e+00 : f32
      %58 = vector.broadcast %cst_29 : f32 to vector<4x256xf32>
      %c0_30 = arith.constant 0 : index
      %c0_31 = arith.constant 0 : index
      %59 = vector.load %arg9[%c0_30, %c0_31] : memref<4x256xf32, #tpu.memory_space<vmem>>, vector<4x256xf32>
      tpu.vector_store %arg9[%c0_30, %c0_31], %58 {strides = array<i32>} : memref<4x256xf32, #tpu.memory_space<vmem>>, vector<4x256xf32>,
      %cst_32 = arith.constant 0.000000e+00 : f32
      %60 = vector.broadcast %cst_32 : f32 to vector<4x256xf32>
      %c0_33 = arith.constant 0 : index
      %c0_34 = arith.constant 0 : index
      %61 = vector.load %arg10[%c0_33, %c0_34] : memref<4x256xf32, #tpu.memory_space<vmem>>, vector<4x256xf32>
      tpu.vector_store %arg10[%c0_33, %c0_34], %60 {strides = array<i32>} : memref<4x256xf32, #tpu.memory_space<vmem>>, vector<4x256xf32>,
      %cst_35 = arith.constant 0.000000e+00 : f32
      %62 = vector.broadcast %cst_35 : f32 to vector<4x256xf32>
      %c0_36 = arith.constant 0 : index
      %c0_37 = arith.constant 0 : index
      %63 = vector.load %arg11[%c0_36, %c0_37] : memref<4x256xf32, #tpu.memory_space<vmem>>, vector<4x256xf32>
      tpu.vector_store %arg11[%c0_36, %c0_37], %62 {strides = array<i32>} : memref<4x256xf32, #tpu.memory_space<vmem>>, vector<4x256xf32>,
      %cst_38 = arith.constant 0.000000e+00 : f32
      %64 = vector.broadcast %cst_38 : f32 to vector<1x256xf32>
      %c0_39 = arith.constant 0 : index
      %c0_40 = arith.constant 0 : index
      %65 = vector.load %arg12[%c0_39, %c0_40] : memref<1x256xf32, #tpu.memory_space<vmem>>, vector<1x256xf32>
      tpu.vector_store %arg12[%c0_39, %c0_40], %64 {strides = array<i32>} : memref<1x256xf32, #tpu.memory_space<vmem>>, vector<1x256xf32>,
    } else {
    }
    %c0 = arith.constant 0 : index
    %c0_1 = arith.constant 0 : index
    %c0_2 = arith.constant 0 : index
    %3 = vector.load %arg3[%c0, %c0_1, %c0_2] : memref<1x4x256xf32, #tpu.memory_space<vmem>>, vector<1x4x256xf32>
    %4 = vector.shape_cast %3 : vector<1x4x256xf32> to vector<4x256xf32>
    %c0_3 = arith.constant 0 : index
    %c0_4 = arith.constant 0 : index
    %c0_5 = arith.constant 0 : index
    %5 = vector.load %arg4[%c0_3, %c0_4, %c0_5] : memref<1x1x256xi32, #tpu.memory_space<vmem>>, vector<1x1x256xi32>
    %6 = vector.shape_cast %5 : vector<1x1x256xi32> to vector<1x256xi32>
    %cst = arith.constant dense<0xFF800000> : vector<256xf32>
    %7 = vector.multi_reduction <maximumf>, %4, %cst [0] : vector<4x256xf32> to vector<256xf32>
    %8 = vector.shape_cast %7 : vector<256xf32> to vector<1x256xf32>
    %9 = vector.broadcast %8 : vector<1x256xf32> to vector<4x256xf32>
    %10 = arith.subf %4, %9 : vector<4x256xf32>
    %11 = math.exp %10 : vector<4x256xf32>
    %cst_6 = arith.constant dense<0.000000e+00> : vector<256xf32>
    %12 = vector.multi_reduction <add>, %11, %cst_6 [0] : vector<4x256xf32> to vector<256xf32>
    %13 = vector.shape_cast %12 : vector<256xf32> to vector<1x256xf32>
    %14 = tpu.reciprocal %13 : vector<1x256xf32> -> vector<1x256xf32>
    %15 = vector.broadcast %14 : vector<1x256xf32> to vector<4x256xf32>
    %16 = arith.mulf %11, %15 : vector<4x256xf32>
    %17 = tpu.iota {dimensions = array<i32: 0>} : vector<4x1xi32>
    %c1_i32 = arith.constant 1 : i32
    %18 = vector.broadcast %c1_i32 : i32 to vector<1x256xi32>
    %19 = arith.subi %6, %18 : vector<1x256xi32>
    %20 = vector.broadcast %19 : vector<1x256xi32> to vector<4x256xi32>
    %21 = vector.broadcast %17 : vector<4x1xi32> to vector<4x256xi32>
    %22 = arith.cmpi eq, %20, %21 : vector<4x256xi32>
    %23 = arith.extui %22 : vector<4x256xi1> to vector<4x256xi32>
    %24 = arith.sitofp %23 : vector<4x256xi32> to vector<4x256xf32>
    %25 = arith.mulf %16, %24 : vector<4x256xf32>
    %cst_7 = arith.constant dense<0.000000e+00> : vector<256xf32>
    %26 = vector.multi_reduction <add>, %25, %cst_7 [0] : vector<4x256xf32> to vector<256xf32>
    %27 = vector.shape_cast %26 : vector<256xf32> to vector<1x256xf32>
    %28 = arith.mulf %4, %24 : vector<4x256xf32>
    %cst_8 = arith.constant dense<0.000000e+00> : vector<256xf32>
    %29 = vector.multi_reduction <add>, %28, %cst_8 [0] : vector<4x256xf32> to vector<256xf32>
    %30 = vector.shape_cast %29 : vector<256xf32> to vector<1x256xf32>
    %c1_i32_9 = arith.constant 1 : i32
    %31 = vector.broadcast %c1_i32_9 : i32 to vector<1x256xi32>
    %32 = arith.cmpi sge, %6, %31 : vector<1x256xi32>
    %33 = arith.extui %32 : vector<1x256xi1> to vector<1x256xi32>
    %34 = arith.sitofp %33 : vector<1x256xi32> to vector<1x256xf32>
    %cst_10 = arith.constant 1.000000e+00 : f32
    %35 = vector.broadcast %cst_10 : f32 to vector<1x256xf32>
    %36 = arith.subf %35, %27 : vector<1x256xf32>
    %37 = math.log %13 : vector<1x256xf32>
    %38 = arith.subf %8, %30 : vector<1x256xf32>
    %39 = arith.addf %37, %38 : vector<1x256xf32>
    %40 = arith.mulf %34, %39 : vector<1x256xf32>
    %41 = arith.mulf %36, %36 : vector<1x256xf32>
    %42 = arith.mulf %40, %41 : vector<1x256xf32>
    %c0_11 = arith.constant 0 : index
    %c0_12 = arith.constant 0 : index
    %43 = vector.load %arg9[%c0_11, %c0_12] : memref<4x256xf32, #tpu.memory_space<vmem>>, vector<4x256xf32>
    %44 = arith.addf %43, %25 : vector<4x256xf32>
    %c0_13 = arith.constant 0 : index
    %c0_14 = arith.constant 0 : index
    %45 = vector.load %arg9[%c0_13, %c0_14] : memref<4x256xf32, #tpu.memory_space<vmem>>, vector<4x256xf32>
    tpu.vector_store %arg9[%c0_13, %c0_14], %44 {strides = array<i32>} : memref<4x256xf32, #tpu.memory_space<vmem>>, vector<4x256xf32>,
    %c0_15 = arith.constant 0 : index
    %c0_16 = arith.constant 0 : index
    %46 = vector.load %arg10[%c0_15, %c0_16] : memref<4x256xf32, #tpu.memory_space<vmem>>, vector<4x256xf32>
    %47 = arith.addf %46, %16 : vector<4x256xf32>
    %c0_17 = arith.constant 0 : index
    %c0_18 = arith.constant 0 : index
    %48 = vector.load %arg10[%c0_17, %c0_18] : memref<4x256xf32, #tpu.memory_space<vmem>>, vector<4x256xf32>
    tpu.vector_store %arg10[%c0_17, %c0_18], %47 {strides = array<i32>} : memref<4x256xf32, #tpu.memory_space<vmem>>, vector<4x256xf32>,
    %c0_19 = arith.constant 0 : index
    %c0_20 = arith.constant 0 : index
    %49 = vector.load %arg11[%c0_19, %c0_20] : memref<4x256xf32, #tpu.memory_space<vmem>>, vector<4x256xf32>
    %50 = arith.addf %49, %24 : vector<4x256xf32>
    %c0_21 = arith.constant 0 : index
    %c0_22 = arith.constant 0 : index
    %51 = vector.load %arg11[%c0_21, %c0_22] : memref<4x256xf32, #tpu.memory_space<vmem>>, vector<4x256xf32>
    tpu.vector_store %arg11[%c0_21, %c0_22], %50 {strides = array<i32>} : memref<4x256xf32, #tpu.memory_space<vmem>>, vector<4x256xf32>,
    %c0_23 = arith.constant 0 : index
    %c0_24 = arith.constant 0 : index
    %52 = vector.load %arg12[%c0_23, %c0_24] : memref<1x256xf32, #tpu.memory_space<vmem>>, vector<1x256xf32>
    %53 = arith.addf %52, %42 : vector<1x256xf32>
    %c0_25 = arith.constant 0 : index
    %c0_26 = arith.constant 0 : index
    %54 = vector.load %arg12[%c0_25, %c0_26] : memref<1x256xf32, #tpu.memory_space<vmem>>, vector<1x256xf32>
    tpu.vector_store %arg12[%c0_25, %c0_26], %53 {strides = array<i32>} : memref<1x256xf32, #tpu.memory_space<vmem>>, vector<1x256xf32>,
    %c0_i32_27 = arith.constant 0 : i32
    %55 = arith.cmpi eq, %arg2, %c0_i32_27 : i32
    %56 = arith.extui %55 : i1 to i32
    %c0_i32_28 = arith.constant 0 : i32
    %57 = arith.cmpi ne, %56, %c0_i32_28 : i32
    scf.if %57 {
      %c0_29 = arith.constant 0 : index
      %c0_30 = arith.constant 0 : index
      %58 = vector.load %arg9[%c0_29, %c0_30] : memref<4x256xf32, #tpu.memory_space<vmem>>, vector<4x256xf32>
      %cst_31 = arith.constant dense<0.000000e+00> : vector<4xf32>
      %59 = vector.multi_reduction <add>, %58, %cst_31 [1] : vector<4x256xf32> to vector<4xf32>
      %60 = vector.shape_cast %59 : vector<4xf32> to vector<4x1xf32>
      %61 = vector.shape_cast %60 : vector<4x1xf32> to vector<4x1xf32>
      %62 = vector.broadcast %61 : vector<4x1xf32> to vector<4x128xf32>
      %c0_32 = arith.constant 0 : index
      %c0_33 = arith.constant 0 : index
      %c0_34 = arith.constant 0 : index
      %c0_35 = arith.constant 0 : index
      %63 = vector.load %arg5[%c0_32, %c0_33, %c0_34, %c0_35] : memref<1x1x4x128xf32, #tpu.memory_space<vmem>>, vector<1x1x4x128xf32>
      %64 = vector.shape_cast %63 : vector<1x1x4x128xf32> to vector<4x128xf32>
      %65 = vector.shape_cast %62 : vector<4x128xf32> to vector<1x1x4x128xf32>
      tpu.vector_store %arg5[%c0_32, %c0_33, %c0_34, %c0_35], %65 {strides = array<i32>} : memref<1x1x4x128xf32, #tpu.memory_space<vmem>>, vector<1x1x4x128xf32>,
      %c0_36 = arith.constant 0 : index
      %c0_37 = arith.constant 0 : index
      %66 = vector.load %arg10[%c0_36, %c0_37] : memref<4x256xf32, #tpu.memory_space<vmem>>, vector<4x256xf32>
      %cst_38 = arith.constant dense<0.000000e+00> : vector<4xf32>
      %67 = vector.multi_reduction <add>, %66, %cst_38 [1] : vector<4x256xf32> to vector<4xf32>
      %68 = vector.shape_cast %67 : vector<4xf32> to vector<4x1xf32>
      %69 = vector.shape_cast %68 : vector<4x1xf32> to vector<4x1xf32>
      %70 = vector.broadcast %69 : vector<4x1xf32> to vector<4x128xf32>
      %c0_39 = arith.constant 0 : index
      %c0_40 = arith.constant 0 : index
      %c0_41 = arith.constant 0 : index
      %c0_42 = arith.constant 0 : index
      %71 = vector.load %arg6[%c0_39, %c0_40, %c0_41, %c0_42] : memref<1x1x4x128xf32, #tpu.memory_space<vmem>>, vector<1x1x4x128xf32>
      %72 = vector.shape_cast %71 : vector<1x1x4x128xf32> to vector<4x128xf32>
      %73 = vector.shape_cast %70 : vector<4x128xf32> to vector<1x1x4x128xf32>
      tpu.vector_store %arg6[%c0_39, %c0_40, %c0_41, %c0_42], %73 {strides = array<i32>} : memref<1x1x4x128xf32, #tpu.memory_space<vmem>>, vector<1x1x4x128xf32>,
      %c0_43 = arith.constant 0 : index
      %c0_44 = arith.constant 0 : index
      %74 = vector.load %arg11[%c0_43, %c0_44] : memref<4x256xf32, #tpu.memory_space<vmem>>, vector<4x256xf32>
      %cst_45 = arith.constant dense<0.000000e+00> : vector<4xf32>
      %75 = vector.multi_reduction <add>, %74, %cst_45 [1] : vector<4x256xf32> to vector<4xf32>
      %76 = vector.shape_cast %75 : vector<4xf32> to vector<4x1xf32>
      %77 = vector.shape_cast %76 : vector<4x1xf32> to vector<4x1xf32>
      %78 = vector.broadcast %77 : vector<4x1xf32> to vector<4x128xf32>
      %c0_46 = arith.constant 0 : index
      %c0_47 = arith.constant 0 : index
      %c0_48 = arith.constant 0 : index
      %c0_49 = arith.constant 0 : index
      %79 = vector.load %arg7[%c0_46, %c0_47, %c0_48, %c0_49] : memref<1x1x4x128xf32, #tpu.memory_space<vmem>>, vector<1x1x4x128xf32>
      %80 = vector.shape_cast %79 : vector<1x1x4x128xf32> to vector<4x128xf32>
      %81 = vector.shape_cast %78 : vector<4x128xf32> to vector<1x1x4x128xf32>
      tpu.vector_store %arg7[%c0_46, %c0_47, %c0_48, %c0_49], %81 {strides = array<i32>} : memref<1x1x4x128xf32, #tpu.memory_space<vmem>>, vector<1x1x4x128xf32>,
      %c0_50 = arith.constant 0 : index
      %c0_51 = arith.constant 0 : index
      %82 = vector.load %arg12[%c0_50, %c0_51] : memref<1x256xf32, #tpu.memory_space<vmem>>, vector<1x256xf32>
      %cst_52 = arith.constant dense<0.000000e+00> : vector<1xf32>
      %83 = vector.multi_reduction <add>, %82, %cst_52 [1] : vector<1x256xf32> to vector<1xf32>
      %84 = vector.shape_cast %83 : vector<1xf32> to vector<1x1xf32>
      %85 = vector.shape_cast %84 : vector<1x1xf32> to vector<1x1xf32>
      %86 = vector.broadcast %85 : vector<1x1xf32> to vector<1x128xf32>
      %c0_53 = arith.constant 0 : index
      %c0_54 = arith.constant 0 : index
      %c0_55 = arith.constant 0 : index
      %c0_56 = arith.constant 0 : index
      %87 = vector.load %arg8[%c0_53, %c0_54, %c0_55, %c0_56] : memref<1x1x1x128xf32, #tpu.memory_space<vmem>>, vector<1x1x1x128xf32>
      %88 = vector.shape_cast %87 : vector<1x1x1x128xf32> to vector<1x128xf32>
      %89 = vector.shape_cast %86 : vector<1x128xf32> to vector<1x1x1x128xf32>
      tpu.vector_store %arg8[%c0_53, %c0_54, %c0_55, %c0_56], %89 {strides = array<i32>} : memref<1x1x1x128xf32, #tpu.memory_space<vmem>>, vector<1x1x1x128xf32>,
    } else {
    }
    return
  }
  func.func @transform_0(%arg0: i32, %arg1: i32, %arg2: i32) -> (i32, i32, i32) {
    %c1_i32 = arith.constant 1 : i32
    %0 = arith.muli %arg1, %c1_i32 : i32
    %1 = arith.addi %0, %arg2 : i32
    %c0_i32 = arith.constant 0 : i32
    %c0_i32_0 = arith.constant 0 : i32
    return %arg0, %c0_i32, %1 : i32, i32, i32
  }
  func.func @transform_1(%arg0: i32, %arg1: i32, %arg2: i32) -> (i32, i32, i32) {
    %c1_i32 = arith.constant 1 : i32
    %0 = arith.muli %arg1, %c1_i32 : i32
    %1 = arith.addi %0, %arg2 : i32
    %c0_i32 = arith.constant 0 : i32
    %c0_i32_0 = arith.constant 0 : i32
    return %arg0, %c0_i32, %1 : i32, i32, i32
  }
  func.func @transform_2(%arg0: i32, %arg1: i32, %arg2: i32) -> (i32, i32, i32, i32) {
    %c0_i32 = arith.constant 0 : i32
    %c0_i32_0 = arith.constant 0 : i32
    %c0_i32_1 = arith.constant 0 : i32
    return %arg0, %arg1, %c0_i32, %c0_i32_0 : i32, i32, i32, i32
  }
  func.func @transform_3(%arg0: i32, %arg1: i32, %arg2: i32) -> (i32, i32, i32, i32) {
    %c0_i32 = arith.constant 0 : i32
    %c0_i32_0 = arith.constant 0 : i32
    %c0_i32_1 = arith.constant 0 : i32
    return %arg0, %arg1, %c0_i32, %c0_i32_0 : i32, i32, i32, i32
  }
  func.func @transform_4(%arg0: i32, %arg1: i32, %arg2: i32) -> (i32, i32, i32, i32) {
    %c0_i32 = arith.constant 0 : i32
    %c0_i32_0 = arith.constant 0 : i32
    %c0_i32_1 = arith.constant 0 : i32
    return %arg0, %arg1, %c0_i32, %c0_i32_0 : i32, i32, i32, i32
  }
  func.func @transform_5(%arg0: i32, %arg1: i32, %arg2: i32) -> (i32, i32, i32, i32) {
    %c0_i32 = arith.constant 0 : i32
    %c0_i32_0 = arith.constant 0 : i32
    %c0_i32_1 = arith.constant 0 : i32
    return %arg0, %arg1, %c0_i32, %c0_i32_0 : i32, i32, i32, i32
  }
}

</mosaic_0001>

<bundles_post_ra>
// kernel: tpu_custom_call.1
= control target key start
LH: loop header
LB: loop body
LE: loop exit
PB: predicated region body
PF: predicated region fallthrough
CT: control target
= control target key end

     0   :  { %s1581_s0 = inlined_call_operand.hbm [shape: f32[2,4,256], index: 0, kind: input, shape index: {}]   ;;  %s1582_s1 = inlined_call_operand.hbm [shape: s32[2,1,256], index: 1, kind: input, shape index: {}]   ;;  %s1583_s2 = inlined_call_operand.hbm [shape: f32[2,1,4,128], index: 2, kind: output, shape index: {0}]   ;;  %s1584_s3 = inlined_call_operand.hbm [shape: f32[2,1,4,128], index: 3, kind: output, shape index: {1}]   ;;  %s1585_s4 = inlined_call_operand.hbm [shape: f32[2,1,4,128], index: 4, kind: output, shape index: {2}]   ;;  %s1586_s5 = inlined_call_operand.hbm [shape: f32[2,1,1,128], index: 5, kind: output, shape index: {3}]  }
   0x1   :  { %1591 = sst [smem:[#allocation25_spill]] %s1581_s0 }
   0x2   :  { %1592 = sst [smem:[#allocation26_spill]] %s1582_s1 }
   0x3   :  { %11 = vsyncpa [#allocation7], 0 }
   0x4   :  { %13 = vsyncpa [#allocation7 + $0x1], 0 }
   0x5   :  { %14 = vsyncpa [#allocation10], 0 }
   0x6   :  { %16 = vsyncpa [#allocation10 + $0x1], 0 }
   0x7   :  { %17 = vsyncpa [#allocation8], 0 }
   0x8   :  { %19 = vsyncpa [#allocation8 + $0x1], 0 }
   0x9   :  { %20 = vsyncpa [#allocation13], 0 }
   0xa   :  { %22 = vsyncpa [#allocation13 + $0x1], 0 }
   0xb   :  { %23 = vsyncpa [#allocation16], 0 }
   0xc   :  { %25 = vsyncpa [#allocation16 + $0x1], 0  ;;  %s1261_s18 = smov 0   ;;  %s1263_s19 = smov 0  }
   0xd   :  { %s1265_s20 = smov 0   ;;  %s1267_s21 = smov 0  }
   0xe   :  { %s1269_s22 = smov 0   ;;  %s1271_s23 = smov 0  }
   0xf LB: > { %1593 = sst [smem:[#allocation22_spill]] %s1217_s22  ;;  %s1292_s24 = sadd.s32 4294967295, %s1221_s23   ;;  %s1221_s23 = sphi %s1271_s23, %s31_s23   ;;  %s1217_s22 = sphi %s1269_s22, %s1611_s22   ;;  %s1213_s21 = sphi %s1267_s21, %s1610_s21   ;;  %s1209_s20 = sphi %s1265_s20, %s1614_s20   ;;  %s1205_s19 = sphi %s1263_s19, %s1613_s19   ;;  %s1201_s18 = sphi %s1261_s18, %s1612_s18  }
  0x10   : > { %s1587_s25 = sadd.s32 4294967294, %s1221_s23   ;;  %s50_s26 = sadd.s32 1, %s1217_s22 }
  0x11   : > { %s61_s27 = sadd.s32 1, %s1209_s20  ;;  %p52_p0 = scmp.ge.s32.totalorder %s50_s26, 2 }
  0x12   : > { %p68_p1 = scmp.ne.s32.totalorder %s1209_s20, %s1205_s19  ;;  %p69_p2 = scmp.eq.s32.totalorder %s1221_s23, 0 }
  0x13   : > { %p74_p3 = scmp.ne.s32.totalorder %s1205_s19, %s1201_s18  ;;  %s1616_s26 = smov (%p52_p0, %s50_s26), 0 }
  0x14   : > { %1594 = sst [smem:[#allocation23_spill]] %s1616_s26  ;;  %p1304_p4 = por %p69_p2, %p68_p1 }
  0x15   : > { %p75_p5 = scmp.eq.s32.totalorder %s1292_s24, 0  ;;  %s56_s29 = ssub.s32 %s1217_s22, %s1616_s26 }
  0x16   : > { %p130_p6 = scmp.eq.s32.totalorder %s1292_s24, 1  ;;  %p59_p7 = scmp.eq.s32.totalorder %s56_s29, 0 }
  0x17   : > { %p1312_p8 = por %p75_p5, %p74_p3  ;;  %p136_p10 = scmp.eq.s32.totalorder %s1587_s25, 1 }
  0x18   : > { %p1316_p9 = por %p130_p6, %p68_p1  ;;  %p932_p13 = scmp.lt.s32.totalorder %s1221_s23, 2 }
  0x19   : > { %s1323_s7 = scalar_select %p59_p7, %s1209_s20, %s61_s27  }
  0x1a   : > { %p1325_p11 = por %p136_p10, %p74_p3  ;;  %s1332_s9 = sand.u32 1, %s1209_s20  }
  0x1b   : > { %1598 = sst [smem:[#allocation24_spill]] %s1323_s7  ;;  %s872_s10 = sshll.u32 %s1332_s9, 3 }
  0x1c   : > { %s897_s11 = sshll.u32 %s1217_s22, 7  ;;  %s1600_s0 = sld [smem:[#allocation25_spill]] }
  0x1d   : > { %s244_s15 = scalar_lea.vmem [#allocation6], %s872_s10  ;;  %p1341_p0 = pnand %p932_p13, %p1304_p4 }
  0x1e   : > { %s255_s16 = sshll.u32 %s244_s15, 4  ;;  %p878_p1 = scmp.ge.s32.totalorder %s1221_s23, 1  ;;  %s256_s16 = int_to_ptr.vmem [resolvable:$true] %s255_s16 }
  0x1f   : > { %p282_p2 = scmp.lt.s32.totalorder %s1221_s23, 3  ;;  %s241_s27 = scalar_lea.sflag [#allocation7], %s1332_s9 }
  0x20   : > { %p997_p3 = pneg %p1341_p0  ;;  %s1008_s29 = scalar_lea.vmem %s256_s16, 128 }
  0x21   : > { %p1009_p5 = scmp.ne.s32.totalorder %s256_s16, %s1008_s29  ;;  %s1223_s10 = smov [#allocation6]  }
  0x22   : > { %s253_s14 = scalar_lea.hbm %s1600_s0, %s897_s11  ;;  %s1013_s11 = sshll.u32 %s1223_s10, 4  ;;  %s1014_s11 = int_to_ptr.vmem [resolvable:$false] %s1013_s11 }
  0x23   : > { %p1011_p6 = pnand %p1009_p5, %p997_p3  ;;  %s1015_s28 = scalar_lea.vmem %s1014_s11, 256 }
  0x24   : > { %p1016_p4 = scmp.lt.s32.totalorder %s256_s16, %s1014_s11  ;;  %p1017_p10 = scmp.lt.s32.totalorder %s1015_s28, %s1008_s29 }
  0x25   : > { %p1012_p7 = pneg %p1011_p6 }
  0x26   : > { %p1018_p13 = por %p1017_p10, %p1016_p4 }
  0x28   : > { %p1019_p12 = pnand %p1018_p13, %p1012_p7 }
  0x2a   : > { %1022 = shalt.err (!%p1019_p12)
}
  0x2b   : > { %915 = dma.hbm_to_vmem [thread:$0]  (!%p1341_p0), %s253_s14, 128, %s256_s16, %s241_s27  }
  0x2c   : > { %p1359_p5 = pnand %p878_p1, %p282_p2  ;;  %s875_s13 = sshll.u32 %s1332_s9, 1 }
  0x2d   : > { %s898_s15 = sshll.u32 %s1217_s22, 5  ;;  %s1603_s1 = sld [smem:[#allocation26_spill]] }
  0x2e   : > { %s266_s28 = scalar_lea.vmem [#allocation9], %s875_s13  ;;  %s263_s0 = scalar_lea.sflag [#allocation10], %s1332_s9 }
  0x2f   : > { %s277_s25 = sshll.u32 %s266_s28, 4  ;;  %s1224_s14 = smov [#allocation9]   ;;  %s278_s25 = int_to_ptr.vmem [resolvable:$true] %s277_s25 }
  0x30   : > { %s1036_s26 = scalar_lea.vmem %s278_s25, 32  ;;  %s1041_s16 = sshll.u32 %s1224_s14, 4  ;;  %s1042_s16 = int_to_ptr.vmem [resolvable:$false] %s1041_s16 }
  0x31   : > { %p1037_p12 = scmp.ne.s32.totalorder %s278_s25, %s1036_s26  ;;  %s1043_s27 = scalar_lea.vmem %s1042_s16, 64 }
  0x32   : > { %p1044_p1 = scmp.lt.s32.totalorder %s278_s25, %s1042_s16  ;;  %p1045_p2 = scmp.lt.s32.totalorder %s1043_s27, %s1036_s26 }
  0x33   : > { %s275_s11 = scalar_lea.hbm %s1603_s1, %s898_s15  ;;  %p1039_p6 = pnand %p1037_p12, %p997_p3 }
  0x34   : > { %p1046_p4 = por %p1045_p2, %p1044_p1 }
  0x35   : > { %p1040_p7 = pneg %p1039_p6 }
  0x37   : > { %p1047_p10 = pnand %p1046_p4, %p1040_p7 }
  0x39   : > { %1050 = shalt.err (!%p1047_p10)
}
  0x3a   : > { %918 = dma.hbm_to_vmem [thread:$0]  (!%p1341_p0), %s275_s11, 32, %s278_s25, %s263_s0  }
  0x3b   : > { %286 = sbr.rel (%p1359_p5) target bundleno = 362 (0x16a), region = 28  ;;  %s1377_s9 = sand.u32 (!%p1359_p5), 1, %s1205_s19  }
  0x3c   : > { %s879_s13 = sshll.u32 (!%p1359_p5), %s1377_s9, 3  ;;  %s289_s15 = scalar_lea.sflag (!%p1359_p5), [#allocation7], %s1377_s9 }
  0x3d   : > { %s292_s29 = scalar_lea.vmem (!%p1359_p5), [#allocation6], %s879_s13 }
  0x40   : > { %1180 = dma.done.wait (%p1312_p8), %s289_s15, 128  }
  0x41   : > { %1182 = vsyncadd (%p1312_p8), %s289_s15, 4294967168  ;;  %s880_s0 = sshll.u32 %s1377_s9, 1  ;;  %s298_s25 = scalar_lea.sflag [#allocation10], %s1377_s9 }
  0x42   : > { %s301_s26 = scalar_lea.vmem [#allocation9], %s880_s0 }
  0x43   : > { %1184 = dma.done.wait (%p1312_p8), %s298_s25, 32  }
  0x44   : > { %1186 = vsyncadd (%p1312_p8), %s298_s25, 4294967264  ;;  %v358_v0 = vlaneseq  ;;  %v1225_v3 = vmov 0.0   ;;  %vm368_vm1 = vcmask 1043456   ;;  %v364_v6 = vld [vmem:[%s301_s26] sm:$0x3]  ;;  %v363_v7 = vld [vmem:[%s292_s29] sm:$0xff] }
  0x45   : > { %v884_v8 = vadd.s32 4294967295, %v364_v6  ;;  %vm471_vm2 = vcmp.ge.s32.totalorder %v364_v6, 1  ;;  %v366_v9 = vcombine.high %v363_v7, %v363_v7  ;;  %v369_v10 = vsel %vm368_vm1, %v363_v7, -inf  ;;  %s1435_s30 = sshll.u32 %s1377_s9, 2  ;;  %s597_s28 = sand.u32 1, %s1292_s24  }
  0x46   : > { %vm1391_vm0 = vcmp.lt.s32.totalorder %v358_v0, 256  ;;  %v1395_v2 = vshrl.u32 %v358_v0, 7  ;;  %v1402_v11 = vsel %vm471_vm2, 1.0, %v1225_v3  ;;  %v370_v12 = vrot.slane %v369_v10, 4  ;;  %s340_s17 = scalar_lea.vmem [#allocation14], %s1435_s30  ;;  %s333_s10 = scalar_lea.vmem [#allocation12], %s1435_s30 }
  0x47   : > { %362 = vst.msk [vmem:[#allocation5] sm:$0x3] %vm1391_vm0, %v1225_v3  ;;  %v376_v15 = vsel %vm368_vm1, %v366_v9, -inf  ;;  %vm585_vm5 = vcmask 1040384   ;;  %s649_s12 = sshll.u32 %s340_s17, 4  ;;  %s635_s11 = sshll.u32 %s333_s10, 4  ;;  %s1444_s12 = int_to_ptr.vmem [resolvable:$true] %s649_s12  ;;  %s1446_s11 = int_to_ptr.vmem [resolvable:$true] %s635_s11 }
  0x48   : > { %v419_v4 = vsub.s32 0, %v1395_v2  ;;  %v423_v5 = vsub.s32 1, %v1395_v2  ;;  %v371_v16 = vmax.f32 %v369_v10, %v370_v12  ;;  %v377_v17 = vrot.slane %v376_v15, 4  ;;  %s891_s14 = sshll.u32 %s1213_s21, 6  ;;  %s1589_s16 = scalar_lea.vmem [#allocation11], %s1435_s30 }
  0x49   : > { %v1226_v12 = vmov 1966171168   ;;  %s621_s27 = sshll.u32 %s1589_s16, 4  ;;  %s1451_s29 = scalar_lea.hbm %s1584_s3, %s891_s14  ;;  %s1453_s27 = int_to_ptr.vmem [resolvable:$true] %s621_s27 }
  0x4a   : > { %v420_v13 = vrot.slane %v884_v8, %v419_v4  ;;  %v424_v14 = vrot.slane %v884_v8, %v423_v5  ;;  %v372_v20 = vrot.slane %v371_v16, 2  ;;  %v378_v21 = vmax.f32 %v376_v15, %v377_v17  ;;  %s1458_s25 = scalar_lea.hbm %s1585_s4, %s891_s14  ;;  %s1463_s16 = scalar_lea.hbm %s1583_s2, %s891_s14 }
  0x4b   : > { %s1465_s13 = scalar_lea.sflag [#allocation13], %s597_s28  ;;  %s1051_s15 = scalar_lea.vmem %s1446_s11, 64 }
  0x4c   : > { %vm425_vm3 = vcmp.eq.s32.totalorder %v420_v13, %v1395_v2  ;;  %vm426_vm4 = vcmp.eq.s32.totalorder %v424_v14, %v1395_v2  ;;  %v373_v24 = vmax.f32 %v371_v16, %v372_v20  ;;  %v379_v25 = vrot.slane %v378_v21, 2  ;;  %p1052_p8 = scmp.ne.s32.totalorder %s1446_s11, %s1051_s15  ;;  %s1227_s1 = smov [#allocation12]  }
  0x4d   : > { %v885_v18 = vsel %vm425_vm3, 1.0, %v1225_v3  ;;  %v886_v19 = vsel %vm426_vm4, 1.0, %v1225_v3  ;;  %v488_v13 = vunpack.c.l.s4 %v1226_v12  ;;  %s1055_s22 = sshll.u32 %s1227_s1, 4  ;;  %s1056_s22 = int_to_ptr.vmem [resolvable:$false] %s1055_s22 }
  0x4e   : > { %v1411_v22 = vcombine.low %v885_v18, %v886_v19  ;;  %v899_v23 = vcombine.low %v886_v19, %v886_v19  ;;  %v374_v30 = vrot.slane %v373_v24, 1  ;;  %v380_v31 = vmax.f32 %v378_v21, %v379_v25  ;;  %p1053_p0 = pnand %p1052_p8, %p1316_p9  ;;  %s1057_s7 = scalar_lea.vmem %s1056_s22, 128 }
  0x4f   : > { %v489_v16 = vunpack.c.0.s8 %v488_v13  ;;  %p1058_p13 = scmp.lt.s32.totalorder %s1446_s11, %s1056_s22  ;;  %p1059_p5 = scmp.lt.s32.totalorder %s1057_s7, %s1051_s15 }
  0x50   : > { %v567_v26 = vsel %vm368_vm1, %v1411_v22, 0.0  ;;  %v568_v27 = vsel %vm368_vm1, %v899_v23, 0.0  ;;  %v453_v28 = vmul.f32 %v1411_v22, %v363_v7  ;;  %v375_v34 = vmax.f32 %v373_v24, %v374_v30  ;;  %p1054_p3 = pneg %p1053_p0 }
  0x51   : > { %v569_v29 = vadd.f32 %v568_v27, %v567_v26  ;;  %v381_v35 = vrot.slane %v380_v31, 1  ;;  %v492_v24 = vsub.s32 %v489_v16, %v1395_v2  ;;  %p1060_p12 = por %p1059_p5, %p1058_p13 }
  0x52   : > { %v455_v32 = vcombine.high %v453_v28, %v453_v28  ;;  %v457_v33 = vsel %vm368_vm1, %v453_v28, 0.0 }
  0x53   : > { %570 = vadd.xlane.f32.xlu1 %v569_v29  ;;  %v458_v36 = vrot.slane %v457_v33, 4  ;;  %v382_v38 = vmax.f32 %v380_v31, %v381_v35  ;;  %p1061_p6 = pnand %p1060_p12, %p1054_p3 }
  0x54   : > { %v464_v37 = vsel %vm368_vm1, %v455_v32, 0.0 }
  0x55   : > { %v459_v39 = vadd.f32 %v458_v36, %v457_v33  ;;  %v465_v40 = vrot.slane %v464_v37, 4  ;;  %v385_v41 = vcombine.low %v375_v34, %v382_v38 }
  0x57   : > { %v460_v42 = vrot.slane %v459_v39, 2  ;;  %v466_v43 = vadd.f32 %v465_v40, %v464_v37  ;;  %v387_v44 = vsub.f32 %v363_v7, %v385_v41 }
  0x59   : > { %v461_v45 = vadd.f32 %v460_v42, %v459_v39  ;;  %v467_v46 = vrot.slane %v466_v43, 2  ;;  %v388_v47 = vmul.f32 1.442695, %v387_v44 }
  0x5b   : > { %v462_v48 = vrot.slane %v461_v45, 1  ;;  %v468_v49 = vadd.f32 %v467_v46, %v466_v43  ;;  %985 = vpow2.f32 %v388_v47 }
  0x5d   : > { %v463_v50 = vadd.f32 %v462_v48, %v461_v45  ;;  %v469_v51 = vrot.slane %v468_v49, 1 }
  0x5f   : > { %v470_v52 = vadd.f32 %v469_v51, %v468_v49  ;;  %v480_v53 = vsub.f32 %v375_v34, %v463_v50 }
  0x61   : > { %v481_v54 = vsub.f32 %v382_v38, %v470_v52 }
  0x68   : > { %v986_v55 = vpop.eup %985 }
  0x69   : > { %v391_v56 = vcombine.high %v986_v55, %v986_v55  ;;  %v393_v57 = vsel %vm368_vm1, %v986_v55, 0.0 }
  0x6a   : > { %v394_v58 = vrot.slane %v393_v57, 4 }
  0x6b   : > { %v400_v59 = vsel %vm368_vm1, %v391_v56, 0.0 }
  0x6c   : > { %v395_v60 = vadd.f32 %v394_v58, %v393_v57  ;;  %v401_v61 = vrot.slane %v400_v59, 4  ;;  %v533_v57 = vld [vmem:[#allocation5] sm:$0x3] }
  0x6e   : > { %v396_v62 = vrot.slane %v395_v60, 2  ;;  %v402_v63 = vadd.f32 %v401_v61, %v400_v59 }
  0x70   : > { %v397_v0 = vadd.f32 %v396_v62, %v395_v60  ;;  %v403_v3 = vrot.slane %v402_v63, 2 }
  0x72   : > { %v398_v6 = vrot.slane %v397_v0, 1  ;;  %v404_v7 = vadd.f32 %v403_v3, %v402_v63 }
  0x74   : > { %v399_v8 = vadd.f32 %v398_v6, %v397_v0  ;;  %v405_v9 = vrot.slane %v404_v7, 1 }
  0x76   : > { %v406_v10 = vadd.f32 %v405_v9, %v404_v7  ;;  %987 = vlog2.f32 %v399_v8 }
  0x77   : > { %989 = vrcp.f32 %v399_v8 }
  0x78   : > { %991 = vlog2.f32 %v406_v10 }
  0x79   : > { %993 = vrcp.f32 %v406_v10 }
  0x83   : > { %v988_v14 = vpop.eup %987 }
  0x84   : > { %v990_v15 = vpop.eup %989  ;;  %v477_v17 = vmul.f32 0.6931472, %v988_v14 }
  0x85   : > { %v992_v18 = vpop.eup %991 }
  0x86   : > { %v994_v19 = vpop.eup %993  ;;  %v479_v20 = vmul.f32 0.6931472, %v992_v18  ;;  %v482_v21 = vadd.f32 %v480_v53, %v477_v17 }
  0x87   : > { %v411_v23 = vcombine.low %v990_v15, %v994_v19 }
  0x88   : > { %v483_v25 = vadd.f32 %v481_v54, %v479_v20 }
  0x89   : > { %v413_v26 = vmul.f32 %v986_v55, %v411_v23 }
  0x8a   : > { %v486_v27 = vcombine.low %v482_v21, %v483_v25 }
  0x8b   : > { %v555_v28 = vcombine.high %v413_v26, %v413_v26  ;;  %v557_v29 = vsel %vm368_vm1, %v413_v26, 0.0  ;;  %v435_v30 = vmul.f32 %v1411_v22, %v413_v26 }
  0x8c   : > { %v493_v31 = vrot.slane %v486_v27, %v492_v24 }
  0x8d   : > { %v558_v32 = vsel %vm368_vm1, %v555_v28, 0.0  ;;  %v437_v33 = vcombine.high %v435_v30, %v435_v30  ;;  %v439_v34 = vsel %vm368_vm1, %v435_v30, 0.0 }
  0x8e   : > { %v500_v35 = vrot.slane %v493_v31, %v492_v24  ;;  %v559_v36 = vadd.f32 %v558_v32, %v557_v29  ;;  %v440_v37 = vrot.slane %v439_v34, 4 }
  0x8f   : > { %v446_v38 = vsel %vm368_vm1, %v437_v33, 0.0 }
  0x90   : > { %v502_v39 = vmul.f32 %v1402_v11, %v500_v35  ;;  %560 = vadd.xlane.f32.xlu0 %v559_v36  ;;  %v441_v40 = vadd.f32 %v440_v37, %v439_v34  ;;  %v549_v41 = vadd.f32 %v446_v38, %v439_v34  ;;  %v447_v42 = vrot.slane %v446_v38, 4 }
  0x92   : > { %v442_v43 = vrot.slane %v441_v40, 2  ;;  %v448_v44 = vadd.f32 %v447_v42, %v446_v38 }
  0x94   : > { %v443_v22 = vadd.f32 %v442_v43, %v441_v40  ;;  %550 = vadd.xlane.f32.xlu0 %v549_v41  ;;  %v449_v45 = vrot.slane %v448_v44, 2 }
  0x96   : > { %v444_v46 = vrot.slane %v443_v22, 1  ;;  %v450_v47 = vadd.f32 %v449_v45, %v448_v44 }
  0x98   : > { %v445_v48 = vadd.f32 %v444_v46, %v443_v22  ;;  %v451_v49 = vrot.slane %v450_v47, 1 }
  0x9a   : > { %v474_v50 = vsub.f32 1.0, %v445_v48  ;;  %v452_v51 = vadd.f32 %v451_v49, %v450_v47 }
  0x9c   : > { %v503_v52 = vmul.f32 %v474_v50, %v474_v50  ;;  %v475_v53 = vsub.f32 1.0, %v452_v51 }
  0x9e   : > { %v504_v54 = vmul.f32 %v475_v53, %v475_v53 }
  0xa0   : > { %v507_v11 = vcombine.low %v503_v52, %v504_v54 }
  0xa2   : > { %v514_v55 = vrot.slane %v507_v11, %v492_v24 }
  0xa4   : > { %v521_v56 = vrot.slane %v514_v55, %v492_v24 }
  0xa6   : > { %v523_v58 = vmul.f32 %v521_v56, %v502_v39 }
  0xa8   : > { %v534_v59 = vadd.f32 %v533_v57, %v523_v58 }
  0xaa   : > { %539 = vst.msk [vmem:[#allocation5] sm:$0x3] %vm1391_vm0, %v534_v59 }
  0xb1   : > { %v573_v60 = vld [vmem:[#allocation5] sm:$0x3] }
  0xb2   : > { %v578_v61 = vrot.slane %v573_v60, %v419_v4  ;;  %v582_v62 = vrot.slane %v573_v60, %v423_v5 }
  0xb4   : > { %v586_v63 = vsel %vm585_vm5, %v578_v61, 0.0  ;;  %v587_v0 = vsel %vm585_vm5, %v582_v62, 0.0 }
  0xb5   : > { %v588_v3 = vadd.f32 %v587_v0, %v586_v63 }
  0xb7   : > { %589 = vadd.xlane.f32.xlu1 %v588_v3 }
  0xdc   : > { %v571_v1 = vpop.xlane.xlu1 %570 }
  0xdd   : > { %572 = vst [vmem:[%s340_s17] sm:$0xf] %v571_v1 }
 0x119   : > { %v561_v2 = vpop.xlane.xlu0 %560 }
 0x11a   : > { %562 = vst [vmem:[%s333_s10] sm:$0xf] %v561_v2 }
 0x11b   : > { %1064 = shalt.err (!%p1061_p6)
}
 0x11c   : > { %s1065_s10 = scalar_lea.hbm %s1451_s29, 64  ;;  %s1069_s1 = scalar_lea.hbm %s1584_s3, 128 }
 0x11d   : > { %p1066_p7 = scmp.ne.s32.totalorder %s1451_s29, %s1065_s10  ;;  %p1070_p4 = scmp.lt.s32.totalorder %s1451_s29, %s1584_s3 }
 0x11e   : > { %p1071_p10 = scmp.lt.s32.totalorder %s1069_s1, %s1065_s10 }
 0x11f   : > { %p1067_p1 = pnand %p1066_p7, %p1316_p9 }
 0x120   : > { %p1072_p8 = por %p1071_p10, %p1070_p4 }
 0x121   : > { %p1068_p2 = pneg %p1067_p1 }
 0x123   : > { %p1073_p0 = pnand %p1072_p8, %p1068_p2 }
 0x125   : > { %1076 = shalt.err (!%p1073_p0)
}
 0x126   : > { %905 = dma.vmem_to_hbm [thread:$0]  (%p1316_p9), %s1446_s11, 64, %s1451_s29, %s1465_s13  }
 0x127   : > { %s1077_s22 = scalar_lea.vmem %s1444_s12, 64  ;;  %s1228_s7 = smov [#allocation14]  }
 0x128   : > { %p1078_p3 = scmp.ne.s32.totalorder %s1444_s12, %s1077_s22  ;;  %s1081_s26 = sshll.u32 %s1228_s7, 4  ;;  %s1082_s26 = int_to_ptr.vmem [resolvable:$false] %s1081_s26 }
 0x129   : > { %s1083_s17 = scalar_lea.vmem %s1082_s26, 128  ;;  %p1084_p12 = scmp.lt.s32.totalorder %s1444_s12, %s1082_s26 }
 0x12a   : > { %p1079_p13 = pnand %p1078_p3, %p1316_p9  ;;  %p1085_p6 = scmp.lt.s32.totalorder %s1083_s17, %s1077_s22 }
 0x12c   : > { %p1080_p5 = pneg %p1079_p13  ;;  %p1086_p7 = por %p1085_p6, %p1084_p12 }
 0x12e   : > { %p1087_p1 = pnand %p1086_p7, %p1080_p5 }
 0x130   : > { %1090 = shalt.err (!%p1087_p1)
}
 0x131   : > { %s1091_s15 = scalar_lea.hbm %s1458_s25, 64  ;;  %s1095_s10 = scalar_lea.hbm %s1585_s4, 128 }
 0x132   : > { %p1092_p2 = scmp.ne.s32.totalorder %s1458_s25, %s1091_s15  ;;  %p1096_p8 = scmp.lt.s32.totalorder %s1458_s25, %s1585_s4 }
 0x133   : > { %p1097_p0 = scmp.lt.s32.totalorder %s1095_s10, %s1091_s15 }
 0x134   : > { %p1093_p4 = pnand %p1092_p2, %p1316_p9 }
 0x135   : > { %p1098_p3 = por %p1097_p0, %p1096_p8 }
 0x136   : > { %p1094_p10 = pneg %p1093_p4 }
 0x138   : > { %p1099_p13 = pnand %p1098_p3, %p1094_p10 }
 0x13a   : > { %1102 = shalt.err (!%p1099_p13)
}
 0x13b   : > { %906 = dma.vmem_to_hbm [thread:$0]  (%p1316_p9), %s1444_s12, 64, %s1458_s25, %s1465_s13   ;;  %v551_v4 = vpop.xlane.xlu0 %550 }
 0x13c   : > { %s1606_s1 = scalar_lea.vmem [#allocation11], %s1435_s30  ;;  %s593_s24 = scalar_lea.sflag [#allocation8], %s1377_s9 }
 0x13d   : > { %552 = vst [vmem:[%s1606_s1] sm:$0xf] %v551_v4  ;;  %s1103_s0 = scalar_lea.vmem %s1453_s27, 64  ;;  %s1229_s22 = smov [#allocation11]  }
 0x13e   : > { %p1104_p5 = scmp.ne.s32.totalorder %s1453_s27, %s1103_s0  ;;  %s1107_s7 = sshll.u32 %s1229_s22, 4  ;;  %s1108_s7 = int_to_ptr.vmem [resolvable:$false] %s1107_s7 }
 0x13f   : > { %s1109_s26 = scalar_lea.vmem %s1108_s7, 128  ;;  %p1110_p7 = scmp.lt.s32.totalorder %s1453_s27, %s1108_s7 }
 0x140   : > { %p1105_p12 = pnand %p1104_p5, %p1316_p9  ;;  %p1111_p1 = scmp.lt.s32.totalorder %s1109_s26, %s1103_s0 }
 0x142   : > { %p1106_p6 = pneg %p1105_p12  ;;  %p1112_p2 = por %p1111_p1, %p1110_p7 }
 0x144   : > { %p1113_p4 = pnand %p1112_p2, %p1106_p6 }
 0x146   : > { %1116 = shalt.err (!%p1113_p4)
}
 0x147   : > { %s1117_s30 = scalar_lea.hbm %s1463_s16, 64  ;;  %s1121_s13 = scalar_lea.hbm %s1583_s2, 128 }
 0x148   : > { %p1118_p10 = scmp.ne.s32.totalorder %s1463_s16, %s1117_s30  ;;  %p1122_p3 = scmp.lt.s32.totalorder %s1463_s16, %s1583_s2 }
 0x149   : > { %p1123_p13 = scmp.lt.s32.totalorder %s1121_s13, %s1117_s30 }
 0x14a   : > { %p1119_p8 = pnand %p1118_p10, %p1316_p9 }
 0x14b   : > { %p1124_p5 = por %p1123_p13, %p1122_p3 }
 0x14c   : > { %p1120_p0 = pneg %p1119_p8 }
 0x14e   : > { %p1125_p12 = pnand %p1124_p5, %p1120_p0 }
 0x150   : > { %1128 = shalt.err (!%p1125_p12)
}
 0x151   : > { %904 = dma.vmem_to_hbm [thread:$0]  (%p1316_p9), %s1453_s27, 64, %s1463_s16, %s593_s24   ;;  %v590_v5 = vpop.xlane.xlu1 %589 }
 0x152   : > { %s346_s11 = scalar_lea.vmem [#allocation15], %s1377_s9  ;;  %s894_s10 = sshll.u32 %s1213_s21, 4 }
 0x153   : > { %s663_s29 = sshll.u32 %s346_s11, 4  ;;  %s661_s1 = scalar_lea.hbm %s1586_s5, %s894_s10  ;;  %591 = vst [vmem:[%s346_s11] sm:$0x1] %v590_v5  ;;  %s1534_s29 = int_to_ptr.vmem [resolvable:$true] %s663_s29 }
 0x154   : > { %s608_s0 = scalar_lea.sflag [#allocation16], %s1377_s9  ;;  %s1129_s22 = scalar_lea.vmem %s1534_s29, 16 }
 0x155   : > { %p1130_p6 = scmp.ne.s32.totalorder %s1534_s29, %s1129_s22  ;;  %s1230_s16 = smov [#allocation15]  }
 0x156   : > { %s1133_s27 = sshll.u32 %s1230_s16, 4  ;;  %s1134_s27 = int_to_ptr.vmem [resolvable:$false] %s1133_s27 }
 0x157   : > { %p1131_p7 = pnand %p1130_p6, %p1316_p9  ;;  %s1135_s21 = scalar_lea.vmem %s1134_s27, 32 }
 0x158   : > { %p1136_p2 = scmp.lt.s32.totalorder %s1534_s29, %s1134_s27  ;;  %p1137_p4 = scmp.lt.s32.totalorder %s1135_s21, %s1129_s22 }
 0x159   : > { %p1132_p1 = pneg %p1131_p7 }
 0x15a   : > { %p1138_p10 = por %p1137_p4, %p1136_p2 }
 0x15c   : > { %p1139_p8 = pnand %p1138_p10, %p1132_p1 }
 0x15e   : > { %1142 = shalt.err (!%p1139_p8)
}
 0x15f   : > { %s1143_s24 = scalar_lea.hbm %s661_s1, 16  ;;  %s1147_s26 = scalar_lea.hbm %s1586_s5, 32 }
 0x160   : > { %p1144_p0 = scmp.ne.s32.totalorder %s661_s1, %s1143_s24  ;;  %p1148_p5 = scmp.lt.s32.totalorder %s661_s1, %s1586_s5 }
 0x161   : > { %p1149_p12 = scmp.lt.s32.totalorder %s1147_s26, %s1143_s24 }
 0x162   : > { %p1145_p3 = pnand %p1144_p0, %p1316_p9 }
 0x163   : > { %p1150_p6 = por %p1149_p12, %p1148_p5 }
 0x164   : > { %p1146_p13 = pneg %p1145_p3 }
 0x166   : > { %p1151_p7 = pnand %p1150_p6, %p1146_p13 }
 0x168   : > { %1154 = shalt.err (!%p1151_p7)
}
 0x169   : > { %907 = dma.vmem_to_hbm [thread:$0]  (%p1316_p9), %s1534_s29, 16, %s661_s1, %s608_s0  }
 0x16a PF: > { %s675_s25 = sand.u32 1, %s1201_s18   ;;  %p1607_p1 = scmp.ge.s32.totalorder %s1221_s23, 2 }
 0x16b   : > { %s676_s13 = scalar_lea.sflag [#allocation8], %s675_s25 }
 0x16c   : > { %p920_p2 = pnand %p1607_p1, %p1325_p11 }
 0x16e   : > { %p921_p4 = pneg %p920_p2 }
 0x170   : > { %1188 = dma.done.wait (%p921_p4), %s676_s13, 64  }
 0x171   : > { %1190 = vsyncadd (%p921_p4), %s676_s13, 4294967232  ;;  %s1608_s17 = sadd.s32 4294967294, %s1221_s23  }
 0x172   : > { %s684_s15 = sand.u32 1, %s1608_s17  }
 0x173   : > { %s685_s11 = scalar_lea.sflag [#allocation13], %s684_s15 }
 0x174   : > { %1192 = dma.done.wait (%p921_p4), %s685_s11, 128  }
 0x175   : > { %1194 = vsyncadd (%p921_p4), %s685_s11, 4294967168  ;;  %s703_s6 = scalar_lea.sflag [#allocation16], %s675_s25 }
 0x176   : > { %1196 = dma.done.wait (%p921_p4), %s703_s6, 16  }
 0x177   : > { %1198 = vsyncadd (%p921_p4), %s703_s6, 4294967280  ;;  %s31_s23 = sadd.s32 1, %s1221_s23   ;;  %s1609_s8 = sld [smem:[#allocation24_spill]] }
 0x178   : > { %p28_p9 = scmp.ge.s32.totalorder %s31_s23, 4   ;;  %s1610_s21 = sld [smem:[#allocation22_spill]] }
 0x179   : > { %s1611_s22 = sld [smem:[#allocation23_spill]]  ;;  %s1612_s18 = smov %s1205_s19 }
 0x17a   : > { %s1613_s19 = smov %s1209_s20  ;;  %30 = sbr.rel (!%p28_p9) target bundleno = 15 (0xf), region = 143 }
 0x17d   : > { %s1614_s20 = smov %s1609_s8 }
 0x17f   :  { %707 = vsyncpa [#allocation7], 1 }
 0x180   :  { %709 = vsyncpa [#allocation7 + $0x1], 1 }
 0x181   :  { %710 = vsyncpa [#allocation10], 1 }
 0x182   :  { %712 = vsyncpa [#allocation10 + $0x1], 1 }
 0x183   :  { %713 = vsyncpa [#allocation8], 1 }
 0x184   :  { %715 = vsyncpa [#allocation8 + $0x1], 1 }
 0x185   :  { %716 = vsyncpa [#allocation13], 1 }
 0x186   :  { %718 = vsyncpa [#allocation13 + $0x1], 1 }
 0x187   :  { %719 = vsyncpa [#allocation16], 1 }
 0x188   :  { %721 = vsyncpa [#allocation16 + $0x1], 1 }

</bundles_post_ra>
